<compile_context>
chip_gen: v6e
topology: v6e:2x2x1
jax: 0.10.0
libtpu: 0.0.40
codegen_flags: <defaults>
</compile_context>

<pallas_src>
import functools

import jax
import jax.numpy as jnp
from jax import lax
from jax.experimental import pallas as pl
from jax.experimental.pallas import tpu as pltpu

TILE_M = 2048  # rows of flattened (B*T) processed per grid step


def _round_up(x, m):
    return ((x + m - 1) // m) * m


def _linear_kernel(x_ref, w_ref, b_ref, o_ref):
    # x_ref: (TM, K)  tile of flattened (B*T, 256) activations (bf16 or f32)
    # w_ref: (K, N)   pre-transposed weight, VMEM-resident across the grid
    # b_ref: (1, N)   f32 bias, VMEM-resident
    # o_ref: (TM, N)
    acc = lax.dot_general(
        x_ref[...], w_ref[...],
        dimension_numbers=(((1,), (0,)), ((), ())),   # x @ w  (K on RHS sublanes)
        preferred_element_type=jnp.float32,
    )
    o_ref[...] = (acc + b_ref[...]).astype(o_ref.dtype)


@functools.partial(jax.jit, static_argnames=("compute_dtype",))
def ctc_classifier_mel(dub, weight, bias, *, compute_dtype=jnp.bfloat16):
    """dub: (B, T, 256); weight: (num_classes, 256) [torch layout]; bias: (num_classes,)."""
    B, T, K = dub.shape
    N = weight.shape[0]
    M = B * T

    # Flatten (metadata-only reshape).  Cast activations/weight to the compute
    # dtype; accumulation stays f32 in the kernel.
    # TODO(synk): in a full model the upstream producer should emit bf16
    # directly so this cast fuses into its epilogue instead of a standalone op.
    x = dub.reshape(M, K)
    if compute_dtype is not None and x.dtype != jnp.dtype(compute_dtype):
        x = x.astype(compute_dtype)
    wT = weight.T.astype(x.dtype)              # one-time (K, N) transpose
    b2 = bias.astype(jnp.float32).reshape(1, N)

    # Tile: at most TILE_M rows (multiple of 16 for bf16 sublane packing).
    # No padding: Pallas masks the out-of-bounds rows of the ragged last block.
    tm = min(TILE_M, _round_up(M, 16))
    grid = (pl.cdiv(M, tm),)

    x_item = jnp.dtype(x.dtype).itemsize
    o_item = jnp.dtype(dub.dtype).itemsize
    cost = pl.CostEstimate(
        flops=2 * M * K * N,
        transcendentals=0,
        bytes_accessed=M * K * x_item + K * N * x_item + N * 4 + M * N * o_item,
    )

    out = pl.pallas_call(
        _linear_kernel,
        out_shape=jax.ShapeDtypeStruct((M, N), dub.dtype),
        grid_spec=pltpu.PrefetchScalarGridSpec(
            num_scalar_prefetch=0,
            grid=grid,
            in_specs=[
                pl.BlockSpec((tm, K), lambda i: (i, 0)),   # x: tiled over M
                pl.BlockSpec((K, N), lambda i: (0, 0)),    # weight: VMEM-resident
                pl.BlockSpec((1, N), lambda i: (0, 0)),    # bias: VMEM-resident
            ],
            out_specs=pl.BlockSpec((tm, N), lambda i: (i, 0)),
        ),
        compiler_params=pltpu.CompilerParams(
            dimension_semantics=("parallel",),  # shard M-tiles across TCs (v7x)
        ),
        cost_estimate=cost,
    )(x, wT, b2)

    return out.reshape(B, T, N)


if __name__ == "__main__":
    # Small shapes consistent with the module (Linear(256, num_classes)).
    B, T, K = 2, 8, 256
    NUM_CLASSES = 32

    key = jax.random.PRNGKey(0)
    k_x, k_w, k_b = jax.random.split(key, 3)

    dub = jax.random.normal(k_x, (B, T, K), dtype=jnp.float32)
    # torch Linear default init: U(-1/sqrt(K), 1/sqrt(K)).
    bound = 1.0 / (K ** 0.5)
    weight = jax.random.uniform(k_w, (NUM_CLASSES, K), minval=-bound, maxval=bound,
                                dtype=jnp.float32)
    bias = jax.random.uniform(k_b, (NUM_CLASSES,), minval=-bound, maxval=bound,
                              dtype=jnp.float32)

    def ref_bf16(d, w, b):
        # Same math as the bf16 kernel path: bf16 inputs, f32 accumulate.
        xb = d.reshape(-1, K).astype(jnp.bfloat16).astype(jnp.float32)
        wb = w.astype(jnp.bfloat16).astype(jnp.float32)
        r = jnp.dot(xb, wb.T, precision=lax.Precision.HIGHEST) + b
        return r.reshape(d.shape[0], d.shape[1], -1).astype(d.dtype)

    # 1) Default bf16 compute path, single-tile M.
    out = jax.block_until_ready(ctc_classifier_mel(dub, weight, bias))
    assert out.shape == (B, T, NUM_CLASSES), out.shape
    assert jnp.allclose(out, ref_bf16(dub, weight, bias), atol=1e-3, rtol=1e-3)

    # 2) Ragged multi-tile M path (M = 2100, not a multiple of the 2048-row tile):
    #    exercises the cdiv grid + masked final block (no pad / slice copies).
    B2, T2 = 3, 700
    dub2 = jax.random.normal(jax.random.PRNGKey(1), (B2, T2, K), dtype=jnp.float32)
    out2 = jax.block_until_ready(ctc_classifier_mel(dub2, weight, bias))
    assert out2.shape == (B2, T2, NUM_CLASSES), out2.shape
    assert jnp.allclose(out2, ref_bf16(dub2, weight, bias), atol=1e-3, rtol=1e-3)

    # 3) Pure f32 path (compute_dtype=None keeps the input dtype end-to-end).
    out3 = jax.block_until_ready(
        ctc_classifier_mel(dub, weight, bias, compute_dtype=None))
    ref3 = (dub.reshape(-1, K) @ weight.T + bias).reshape(B, T, NUM_CLASSES)
    assert jnp.allclose(out3, ref3, atol=1e-4, rtol=1e-4)

    print("KERNEL_OK")
</pallas_src>

<mosaic_0001>
module attributes {stable_mosaic.version = 11 : i64} {
  func.func @_linear_kernel(%arg0: i32, %arg1: memref<16x256xbf16, #tpu.memory_space<vmem>>, %arg2: memref<256x32xbf16, #tpu.memory_space<vmem>>, %arg3: memref<1x32xf32, #tpu.memory_space<vmem>>, %arg4: memref<16x32xf32, #tpu.memory_space<vmem>>) attributes {dimension_semantics = [#tpu.dimension_semantics<parallel>], iteration_bounds = array<i64: 1>, scalar_prefetch = 0 : i64, scratch_operands = 0 : i64, tpu.core_type = #tpu.core_type<tc>, window_params = [{transform_indices = @transform_0, window_bounds = array<i64: 16, 256>}, {pipeline_mode = #tpu.pipeline_mode<synchronous>, transform_indices = @transform_1, window_bounds = array<i64: 256, 32>}, {pipeline_mode = #tpu.pipeline_mode<synchronous>, transform_indices = @transform_2, window_bounds = array<i64: 1, 32>}, {transform_indices = @transform_3, window_bounds = array<i64: 16, 32>}]} {
    %c0 = arith.constant 0 : index
    %c0_0 = arith.constant 0 : index
    %0 = vector.load %arg1[%c0, %c0_0] : memref<16x256xbf16, #tpu.memory_space<vmem>>, vector<16x256xbf16>
    %c0_1 = arith.constant 0 : index
    %c0_2 = arith.constant 0 : index
    %1 = vector.load %arg2[%c0_1, %c0_2] : memref<256x32xbf16, #tpu.memory_space<vmem>>, vector<256x32xbf16>
    %cst = arith.constant dense<0.000000e+00> : vector<16x32xf32>
    %2 = tpu.matmul %0, %1, %cst {dimension_numbers = #tpu.dot_dimension_numbers<[1], [0], [0], [1], [0, 0, 1, 1], [], []>} : vector<16x256xbf16>, vector<256x32xbf16>, vector<16x32xf32> -> vector<16x32xf32>
    %c0_3 = arith.constant 0 : index
    %c0_4 = arith.constant 0 : index
    %3 = vector.load %arg3[%c0_3, %c0_4] : memref<1x32xf32, #tpu.memory_space<vmem>>, vector<1x32xf32>
    %4 = vector.broadcast %3 : vector<1x32xf32> to vector<16x32xf32>
    %5 = arith.addf %2, %4 : vector<16x32xf32>
    %c0_5 = arith.constant 0 : index
    %c0_6 = arith.constant 0 : index
    %6 = vector.load %arg4[%c0_5, %c0_6] : memref<16x32xf32, #tpu.memory_space<vmem>>, vector<16x32xf32>
    tpu.vector_store %arg4[%c0_5, %c0_6], %5 {strides = array<i32>} : memref<16x32xf32, #tpu.memory_space<vmem>>, vector<16x32xf32>,
    return
  }
  func.func @transform_0(%arg0: i32) -> (i32, i32) {
    %c0_i32 = arith.constant 0 : i32
    %c0_i32_0 = arith.constant 0 : i32
    return %arg0, %c0_i32 : i32, i32
  }
  func.func @transform_1(%arg0: i32) -> (i32, i32) {
    %c0_i32 = arith.constant 0 : i32
    %c0_i32_0 = arith.constant 0 : i32
    %c0_i32_1 = arith.constant 0 : i32
    return %c0_i32, %c0_i32_0 : i32, i32
  }
  func.func @transform_2(%arg0: i32) -> (i32, i32) {
    %c0_i32 = arith.constant 0 : i32
    %c0_i32_0 = arith.constant 0 : i32
    %c0_i32_1 = arith.constant 0 : i32
    return %c0_i32, %c0_i32_0 : i32, i32
  }
  func.func @transform_3(%arg0: i32) -> (i32, i32) {
    %c0_i32 = arith.constant 0 : i32
    %c0_i32_0 = arith.constant 0 : i32
    return %arg0, %c0_i32 : i32, i32
  }
}

</mosaic_0001>

<bundles_post_ra>
// kernel: ctc_classifier_mel.1
= control target key start
LH: loop header
LB: loop body
LE: loop exit
PB: predicated region body
PF: predicated region fallthrough
CT: control target
= control target key end

     0   :  { %s391_s0 = inlined_call_operand.vmem [shape: bf16[16,256], index: 0, kind: input, shape index: {}]   ;;  %s392_s1 = inlined_call_operand.vmem [shape: bf16[256,32], index: 1, kind: input, shape index: {}]   ;;  %s393_s2 = inlined_call_operand.vmem [shape: f32[1,32], index: 2, kind: input, shape index: {}]   ;;  %s394_s3 = inlined_call_operand.hbm [shape: f32[16,32], index: 3, kind: output, shape index: {}]  }
   0x1   :  { %v267_v0 = vld [vmem:[%s392_s1 + $0x78] sm:$0xff]   ;;  %v269_v2 = vld [vmem:[%s392_s1 + $0x70] sm:$0xff]   ;;  %v271_v4 = vld [vmem:[%s392_s1 + $0x68] sm:$0xff]  }
   0x2   :  { %v268_v1 = vld [vmem:[%s392_s1 + $0x38] sm:$0xff]   ;;  %242 = vmatprep.subr.bf16.mxu0 %v267_v0  ;;  %v270_v3 = vld [vmem:[%s392_s1 + $0x30] sm:$0xff]   ;;  %v272_v5 = vld [vmem:[%s392_s1 + $0x28] sm:$0xff]  }
   0x3   :  { %243 = vmatpush3.bf16.msra.mxu0 %v268_v1  ;;  %v273_v6 = vld [vmem:[%s392_s1 + $0x60] sm:$0xff]   ;;  %v275_v8 = vld [vmem:[%s392_s1 + $0x58] sm:$0xff]   ;;  %v277_v10 = vld [vmem:[%s392_s1 + $0x50] sm:$0xff]  }
   0x4   :  { %244 = vmatprep.subr.bf16.mxu0 %v269_v2  ;;  %v274_v7 = vld [vmem:[%s392_s1 + $0x20] sm:$0xff]   ;;  %v276_v9 = vld [vmem:[%s392_s1 + $0x18] sm:$0xff]  }
   0x5   :  { %v285_v11 = vld [vmem:[%s391_s0 + $0x4] ss:$8 sps:$4 sm:$0xff]  }
   0x7   :  { %245 = vmatpush3.bf16.msra.mxu0 %v270_v3 }
   0x8   :  { %246 = vmatprep.subr.bf16.mxu0 %v271_v4 }
   0xb   :  { %247 = vmatpush3.bf16.msra.mxu0 %v272_v5 }
   0xc   :  { %248 = vmatprep.subr.bf16.mxu0 %v273_v6 }
   0xf   :  { %249 = vmatpush3.bf16.msra.mxu0 %v274_v7 }
  0x10   :  { %250 = vmatprep.subr.bf16.mxu0 %v275_v8 }
  0x11   :  { %8 = vsyncpa [#allocation3], 0  ;;  %v278_v12 = vld [vmem:[%s392_s1 + $0x10] sm:$0xff]   ;;  %195 = vmatprep.mubr.bf16.mxu0 %v285_v11  ;;  %v279_v13 = vld [vmem:[%s392_s1 + $0x48] sm:$0xff]   ;;  %vm204_vm0 = vcmask 261120   ;;  %s308_s23 = smov [#allocation2]  }
  0x12   :  { %v280_v14 = vld [vmem:[%s392_s1 + $0x8] sm:$0xff]   ;;  %v281_v15 = vld [vmem:[%s392_s1 + $0x40] sm:$0xff]   ;;  %s212_s24 = sshll.u32 %s308_s23, 4  ;;  %s213_s24 = int_to_ptr.vmem [resolvable:$true] %s212_s24 }
  0x13   :  { %251 = vmatpush3.bf16.msra.mxu0 %v276_v9  ;;  %v282_v16 = vld [vmem:[%s392_s1] sm:$0xff]   ;;  %p291_p1 = scmp.lt.s32.totalorder %s213_s24, %s213_s24 }
  0x14   :  { %252 = vmatprep.subr.bf16.mxu0 %v277_v10  ;;  %v283_v17 = vld [vmem:[%s391_s0] ss:$8 sps:$4 sm:$0xff]   ;;  %s286_s0 = scalar_lea.vmem %s213_s24, 256 }
  0x15   :  { %v223_v19 = vld [vmem:[%s393_s2] ss:$0 sm:$0xff]  ;;  %p287_p0 = scmp.ne.s32.totalorder %s213_s24, %s286_s0  ;;  %p292_p2 = scmp.lt.s32.totalorder %s286_s0, %s286_s0 }
  0x17   :  { %253 = vmatpush3.bf16.msra.mxu0 %v278_v12  ;;  %p293_p3 = por %p292_p2, %p291_p1 }
  0x18   :  { %254 = vmatprep.subr.bf16.mxu0 %v279_v13 }
  0x19   :  { %p294_p4 = pnand %p293_p3, %p287_p0 }
  0x1b   :  { %255 = vmatpush3.bf16.msra.mxu0 %v280_v14 }
  0x1c   :  { %256 = vmatprep.subr.bf16.mxu0 %v281_v15 }
  0x1f   :  { %257 = vmatpush3.bf16.msra.mxu0 %v282_v16 }
  0x22   :  { %196 = vmatmul.mubr.bf16.vlgmr.msra.gmra.mxu0 %v283_v17 }
  0xe2   :  { %v258_v18 = vpop.f32.mrf.mxu0 }
  0xe4   :  { %v259_v20 = vpop.f32.mrf.mxu0 }
  0xe5   :  { %v260_v21 = vadd.f32 %v259_v20, %v258_v18 }
  0xe6   :  { %v261_v22 = vpop.f32.mrf.mxu0 }
  0xe7   :  { %v198_v23 = vadd.f32 %v260_v21, %v223_v19 }
  0xe8   :  { %v262_v24 = vpop.f32.mrf.mxu0 }
  0xe9   :  { %205 = vst.msk [vmem:[#allocation2] sm:$0xff] %vm204_vm0, %v198_v23  ;;  %v263_v25 = vadd.f32 %v262_v24, %v261_v22 }
  0xeb   :  { %v201_v26 = vadd.f32 %v263_v25, %v223_v19 }
  0xed   :  { %206 = vst.msk [vmem:[#allocation2 + $0x8] sm:$0xff] %vm204_vm0, %v201_v26 }
  0xee   :  { %297 = shalt.err (!%p294_p4)
}
  0xef   :  { %s309_s1 = smov 128   ;;  %s310_s2 = smov 8  }
  0xf0   :  { %218 = dma.vmem_to_hbm [thread:$0]  %s213_s24, 256, %s394_s3, [#allocation3], %s309_s1, %s309_s1, %s310_s2  }
  0xf1   :  { %306 = dma.done.wait [#allocation3], 256  }
  0xf2   :  { %307 = vsyncadd [#allocation3], 4294967040 }
  0xf3   :  { %222 = vsyncpa [#allocation3], 1 }

</bundles_post_ra>
